<compile_context>
chip_gen: v7x
topology: tpu7x:2x2x1
jax: 0.10.0
libtpu: 0.0.40
codegen_flags: <defaults>
</compile_context>

<pallas_src>
import jax
import jax.numpy as jnp
from jax.experimental import pallas as pl
from jax.experimental.pallas import tpu as pltpu

# ----------------------------- module configuration (small test sizes) ---------------------
IN_SCALAR = 16          # AtomEmbedding.in_scalar
IN_VECTOR = 1           # must be 1 (asserted by the PyTorch module)
OUT_SCALAR = 32
OUT_VECTOR = 8
VECTOR_NORMALIZER = 20.0

N_ATOMS = 64
EXTRA_SCALAR_COLS = 5   # scalar_input has extra columns; forward slices [:, :in_scalar]
TILE_N = 32             # rows (atoms) per grid step; multiple of 8 (f32 sublane)

LANE = 128


def _round_up(x, m):
    return (x + m - 1) // m * m


# ----------------------------- Pallas kernel -----------------------------------------------
def atom_embedding_kernel(x_ref, w_ref, b_ref, out_ref):
    # x_ref   : (TILE_N, Din)      packed [scalar_features, vec/normalizer]
    # w_ref   : (Din, Dout_pad)    fused [emb_sca.W | emb_vec.w replicated per xyz] (zero-padded)
    # b_ref   : (1, Dout_pad)      fused [emb_sca.b | emb_vec.b x3] (zero-padded)
    # out_ref : (TILE_N, Dout_pad) lane-dense output slab
    out_ref[...] = (
        jnp.dot(x_ref[...], w_ref[...], preferred_element_type=jnp.float32) + b_ref[...]
    )


# ----------------------------- wrapper ------------------------------------------------------
@jax.jit
def atom_embedding_pallas(scalar_input, vector_input, W_sca, b_sca, w_vec, b_vec):
    """scalar_input (N, >=IN_SCALAR), vector_input (N, 3).
    W_sca: (IN_SCALAR, OUT_SCALAR) pre-transposed, b_sca: (OUT_SCALAR,)
    w_vec: (OUT_VECTOR,)  (= emb_vec.weight[:, 0]),   b_vec: (OUT_VECTOR,)
    Returns (sca_emb (N, OUT_SCALAR), vec_emb (N, OUT_VECTOR, 3))."""
    assert vector_input.shape[1:] == (3,), "Only one vector per atom is supported"
    N = scalar_input.shape[0]

    Din = IN_SCALAR + 3
    Dout = OUT_SCALAR + 3 * OUT_VECTOR
    Dout_pad = _round_up(Dout, LANE)            # lane-dense output slab

    # ---- pack both Linear layers into one fused weight slab (built once, outside kernel) ----
    W = jnp.zeros((Din, Dout_pad), jnp.float32)
    W = W.at[:IN_SCALAR, :OUT_SCALAR].set(W_sca.astype(jnp.float32))
    for k in range(3):  # xyz component k -> its own block of OUT_VECTOR lanes
        lo = OUT_SCALAR + k * OUT_VECTOR
        W = W.at[IN_SCALAR + k, lo:lo + OUT_VECTOR].set(w_vec.astype(jnp.float32))
    b = jnp.zeros((1, Dout_pad), jnp.float32)
    b = b.at[0, :Dout].set(
        jnp.concatenate([b_sca.astype(jnp.float32), jnp.tile(b_vec.astype(jnp.float32), 3)]))

    # ---- packed input: [scalar[:, :in_scalar], vector / normalizer]  (concat done in XLA) ----
    x = jnp.concatenate(
        [scalar_input[:, :IN_SCALAR].astype(jnp.float32),
         (vector_input / VECTOR_NORMALIZER).astype(jnp.float32)], axis=-1)     # (N, Din)

    # pad atoms up to a multiple of TILE_N
    Np = _round_up(N, TILE_N)
    if Np != N:
        x = jnp.pad(x, ((0, Np - N), (0, 0)))

    grid = (Np // TILE_N,)
    out = pl.pallas_call(
        atom_embedding_kernel,
        out_shape=jax.ShapeDtypeStruct((Np, Dout_pad), jnp.float32),
        grid_spec=pltpu.PrefetchScalarGridSpec(
            num_scalar_prefetch=0,
            grid=grid,
            in_specs=[
                pl.BlockSpec((TILE_N, Din), lambda i: (i, 0)),     # atom tile
                pl.BlockSpec((Din, Dout_pad), lambda i: (0, 0)),   # fused weights (resident)
                pl.BlockSpec((1, Dout_pad), lambda i: (0, 0)),     # fused bias    (resident)
            ],
            out_specs=pl.BlockSpec((TILE_N, Dout_pad), lambda i: (i, 0)),
        ),
        compiler_params=pltpu.CompilerParams(
            dimension_semantics=("parallel",),        # shard atom tiles across cores (v7x)
            vmem_limit_bytes=32 * 1024 * 1024,        # explicit, safe on v7x's 64 MiB VMEM
        ),
    )(x, W, b)

    # ---- split the lane-dense slab back into the PyTorch-convention outputs ----
    out = out[:N, :Dout]
    sca_emb = out[:, :OUT_SCALAR]                                            # (N, OUT_SCALAR)
    vec_emb = out[:, OUT_SCALAR:].reshape(N, 3, OUT_VECTOR)                  # (N, 3, OUT_VECTOR)
    vec_emb = jnp.transpose(vec_emb, (0, 2, 1))                              # (N, OUT_VECTOR, 3)
    return sca_emb, vec_emb


# ----------------------------- pure-JAX reference (PyTorch math) ----------------------------
def atom_embedding_ref(scalar_input, vector_input, W_sca, b_sca, w_vec, b_vec):
    v = vector_input / VECTOR_NORMALIZER                                     # (N, 3)
    sca_emb = jnp.dot(scalar_input[:, :IN_SCALAR], W_sca) + b_sca            # (N, OUT_SCALAR)
    vec_emb = v[:, :, None] * w_vec[None, None, :] + b_vec                   # (N, 3, OUT_VECTOR)
    return sca_emb, jnp.transpose(vec_emb, (0, 2, 1))                        # (N, OUT_VECTOR, 3)


# ----------------------------- main ----------------------------------------------------------
if __name__ == "__main__":
    key = jax.random.PRNGKey(0)
    k1, k2, k3, k4, k5, k6 = jax.random.split(key, 6)

    scalar_input = jax.random.normal(
        k1, (N_ATOMS, IN_SCALAR + EXTRA_SCALAR_COLS), dtype=jnp.float32)
    vector_input = jax.random.normal(k2, (N_ATOMS, 3), dtype=jnp.float32)

    # Linear(in_scalar, out_scalar): weight stored pre-transposed (in, out); Linear(1, out_vector)
    W_sca = 0.1 * jax.random.normal(k3, (IN_SCALAR, OUT_SCALAR), dtype=jnp.float32)
    b_sca = 0.1 * jax.random.normal(k4, (OUT_SCALAR,), dtype=jnp.float32)
    w_vec = 0.1 * jax.random.normal(k5, (OUT_VECTOR,), dtype=jnp.float32)
    b_vec = 0.1 * jax.random.normal(k6, (OUT_VECTOR,), dtype=jnp.float32)

    sca_emb, vec_emb = atom_embedding_pallas(
        scalar_input, vector_input, W_sca, b_sca, w_vec, b_vec)
    sca_emb = jax.block_until_ready(sca_emb)
    vec_emb = jax.block_until_ready(vec_emb)

    ref_sca, ref_vec = atom_embedding_ref(
        scalar_input, vector_input, W_sca, b_sca, w_vec, b_vec)

    assert sca_emb.shape == (N_ATOMS, OUT_SCALAR)
    assert vec_emb.shape == (N_ATOMS, OUT_VECTOR, 3)
    # default (bf16-native) MXU precision -> slightly looser tolerance vs exact f32 reference
    assert jnp.allclose(sca_emb, ref_sca, atol=2e-2, rtol=2e-2)
    assert jnp.allclose(vec_emb, ref_vec, atol=2e-2, rtol=2e-2)

    print("KERNEL_OK")
</pallas_src>

<mosaic_0001>
module attributes {stable_mosaic.version = 11 : i64} {
  func.func @atom_embedding_kernel(%arg0: i32, %arg1: memref<32x19xf32, #tpu.memory_space<vmem>>, %arg2: memref<19x128xf32, #tpu.memory_space<vmem>>, %arg3: memref<1x128xf32, #tpu.memory_space<vmem>>, %arg4: memref<32x128xf32, #tpu.memory_space<vmem>>) attributes {dimension_semantics = [#tpu.dimension_semantics<parallel>], iteration_bounds = array<i64: 2>, scalar_prefetch = 0 : i64, scratch_operands = 0 : i64, tpu.core_type = #tpu.core_type<tc>, window_params = [{transform_indices = @transform_0, window_bounds = array<i64: 32, 19>}, {pipeline_mode = #tpu.pipeline_mode<synchronous>, transform_indices = @transform_1, window_bounds = array<i64: 19, 128>}, {pipeline_mode = #tpu.pipeline_mode<synchronous>, transform_indices = @transform_2, window_bounds = array<i64: 1, 128>}, {transform_indices = @transform_3, window_bounds = array<i64: 32, 128>}]} {
    %c0 = arith.constant 0 : index
    %c0_0 = arith.constant 0 : index
    %0 = vector.load %arg1[%c0, %c0_0] : memref<32x19xf32, #tpu.memory_space<vmem>>, vector<32x19xf32>
    %c0_1 = arith.constant 0 : index
    %c0_2 = arith.constant 0 : index
    %1 = vector.load %arg2[%c0_1, %c0_2] : memref<19x128xf32, #tpu.memory_space<vmem>>, vector<19x128xf32>
    %cst = arith.constant dense<0.000000e+00> : vector<32x128xf32>
    %2 = tpu.matmul %0, %1, %cst {dimension_numbers = #tpu.dot_dimension_numbers<[1], [0], [0], [1], [0, 0, 1, 1], [], []>} : vector<32x19xf32>, vector<19x128xf32>, vector<32x128xf32> -> vector<32x128xf32>
    %c0_3 = arith.constant 0 : index
    %c0_4 = arith.constant 0 : index
    %3 = vector.load %arg3[%c0_3, %c0_4] : memref<1x128xf32, #tpu.memory_space<vmem>>, vector<1x128xf32>
    %4 = vector.broadcast %3 : vector<1x128xf32> to vector<32x128xf32>
    %5 = arith.addf %2, %4 : vector<32x128xf32>
    %c0_5 = arith.constant 0 : index
    %c0_6 = arith.constant 0 : index
    %6 = vector.load %arg4[%c0_5, %c0_6] : memref<32x128xf32, #tpu.memory_space<vmem>>, vector<32x128xf32>
    tpu.vector_store %arg4[%c0_5, %c0_6], %5 {strides = array<i32>} : memref<32x128xf32, #tpu.memory_space<vmem>>, vector<32x128xf32>,
    return
  }
  func.func @transform_0(%arg0: i32) -> (i32, i32) {
    %c0_i32 = arith.constant 0 : i32
    %c0_i32_0 = arith.constant 0 : i32
    return %arg0, %c0_i32 : i32, i32
  }
  func.func @transform_1(%arg0: i32) -> (i32, i32) {
    %c0_i32 = arith.constant 0 : i32
    %c0_i32_0 = arith.constant 0 : i32
    %c0_i32_1 = arith.constant 0 : i32
    return %c0_i32, %c0_i32_0 : i32, i32
  }
  func.func @transform_2(%arg0: i32) -> (i32, i32) {
    %c0_i32 = arith.constant 0 : i32
    %c0_i32_0 = arith.constant 0 : i32
    %c0_i32_1 = arith.constant 0 : i32
    return %c0_i32, %c0_i32_0 : i32, i32
  }
  func.func @transform_3(%arg0: i32) -> (i32, i32) {
    %c0_i32 = arith.constant 0 : i32
    %c0_i32_0 = arith.constant 0 : i32
    return %arg0, %c0_i32 : i32, i32
  }
}

</mosaic_0001>

<bundles_post_ra>
// kernel: tile.8
= control target key start
LH: loop header
LB: loop body
LE: loop exit
PB: predicated region body
PF: predicated region fallthrough
CT: control target
= control target key end

     0   :  { %s22_s0 = inlined_call_operand.vmem [shape: f32[8], index: 0, kind: input, shape index: {}]   ;;  %s23_s1 = inlined_call_operand.vmem [shape: f32[3,8], index: 1, kind: output, shape index: {}]  }
   0x1   :  { %v4_v0 = vld [vmem:[%s22_s0] ss:$0 sm:$0xff] }
   0x2   :  { %5 = vst [vmem:[%s23_s1] sm:$0xf] %v4_v0 }

// kernel: atom_embedding_pallas.1
= control target key start
LH: loop header
LB: loop body
LE: loop exit
PB: predicated region body
PF: predicated region fallthrough
CT: control target
= control target key end

     0   :  { %s430_s12 = smov 0   ;;  %s463_s0 = inlined_call_operand.vmem [shape: f32[64,19], index: 0, kind: input, shape index: {}]   ;;  %s464_s1 = inlined_call_operand.vmem [shape: f32[19,128], index: 1, kind: input, shape index: {}]   ;;  %s465_s2 = inlined_call_operand.vmem [shape: f32[1,128], index: 2, kind: input, shape index: {}]   ;;  %s466_s3 = inlined_call_operand.vmem [shape: f32[64,128], index: 3, kind: output, shape index: {}]  }
   0x1 LB: > { %s350_s13 = sadd.s32 4294967295, %s408_s12   ;;  %p354_p0 = scmp.ge.s32.totalorder %s408_s12, 1  ;;  %s408_s12 = sphi %s430_s12, %s13_s12  }
   0x2   : > { %p138_p1 = scmp.lt.s32.totalorder %s408_s12, 3 }
   0x4   : > { %p139_p2 = pnand %p354_p0, %p138_p1 }
   0x5   : > { %v178_v0 = vld [vmem:[%s464_s1] sm:$0xff] (!%p139_p2)  ;;  %v179_v1 = vld [vmem:[%s464_s1 + $0x8] sm:$0xff] (!%p139_p2)  ;;  %s355_s18 = sshll.u32 (!%p139_p2), %s350_s13, 2  ;;  %v180_v3 = vld [vmem:[%s464_s1 + $0x10] sm:$0x7] (!%p139_p2)  ;;  %vm201_vm0 = vcmask (!%p139_p2), 1042432  }
   0x6   : > { %142 = sbr.rel (%p139_p2) target bundleno = 234 (0xea), region = 32  ;;  %v386_v2 = vpack.c.bf16 (!%p139_p2), %v179_v1, %v178_v0  ;;  %p163_p3 = scmp.lt.s32.totalorder (!%p139_p2), %s355_s18, 7  ;;  %vm188_vm1 = vcmask (!%p139_p2), 154624   ;;  %v359_v8 = vld [vmem:[%s465_s2] ss:$0 sm:$0xff] (!%p139_p2) }
   0x8   : > { %387 = vmatprep.subr.bf16.mxu0 (!%p139_p2), %v386_v2  ;;  %390 = vmatprep.subr.bf16.mxu1 (!%p139_p2), %v386_v2 }
   0x9   : > { %389 = vmatpush3.bf16.msra.mxu0 (!%p139_p2), %v386_v2  ;;  %392 = vmatpush3.bf16.msra.mxu1 (!%p139_p2), %v386_v2 }
   0xa   : > { %378 = vmatprep.subr.msk.mxu0 (!%p139_p2), %vm201_vm0, %v180_v3  ;;  %391 = vmatprep.subr.msk.mxu1 (!%p139_p2), %vm201_vm0, %v180_v3 }
   0xd   : > { %s468_s18 = smov (!%p163_p3, %s355_s18), 7  ;;  %379 = vmatpush3.msk.msra.mxu0 %vm201_vm0, %v180_v3  ;;  %393 = vmatpush3.msk.msra.mxu1 %vm201_vm0, %v180_v3 }
   0xe   : > { %s356_s21 = sshll.u32 %s468_s18, 3 }
   0xf   : > { %s166_s24 = scalar_lea.vmem %s463_s0, %s356_s21  ;;  %s172_s29 = scalar_lea.vmem %s466_s3, %s356_s21 }
  0x10   : > { %v174_v4 = vld [vmem:[%s166_s24] sm:$0xff]  ;;  %v175_v5 = vld [vmem:[%s166_s24 + $0x8] sm:$0xff]  ;;  %v176_v6 = vld [vmem:[%s166_s24 + $0x10] sm:$0xff] }
  0x11   : > { %380 = vmatprep.mubr.msk.f32.mxu0 %vm188_vm1, %v174_v4  ;;  %v177_v7 = vld [vmem:[%s166_s24 + $0x18] sm:$0xff]  ;;  %383 = vmatprep.mubr.msk.f32.mxu1 %vm188_vm1, %v176_v6 }
  0x12   : > { %381 = vmatmul.mubr.msk.f32.vlgmr.msra.gmra.mrb[0].mxu0 %vm188_vm1, %v175_v5  ;;  %384 = vmatmul.mubr.msk.f32.vlgmr.msra.gmra.mrb[0].mxu1 %vm188_vm1, %v177_v7 }
  0xe5   : > { %v382_v9 = vpop.f32.mrb[0].mxu0  ;;  %v385_v12 = vpop.f32.mrb[0].mxu1 }
  0xe6   : > { %v271_v10 = vpop.f32.mrb[1].mxu0  ;;  %v277_v13 = vadd.f32 %v382_v9, %v359_v8  ;;  %v281_v14 = vpop.f32.mrb[1].mxu1  ;;  %v287_v16 = vadd.f32 %v385_v12, %v359_v8 }
  0xe7   : > { %v272_v11 = vadd.f32 %v359_v8, %v271_v10  ;;  %v282_v15 = vadd.f32 %v359_v8, %v281_v14 }
  0xe8   : > { %291 = vst [vmem:[%s172_s29 + $0x8] sm:$0xff] %v277_v13  ;;  %293 = vst [vmem:[%s172_s29 + $0x18] sm:$0xff] %v287_v16 }
  0xe9   : > { %290 = vst [vmem:[%s172_s29] sm:$0xff] %v272_v11  ;;  %292 = vst [vmem:[%s172_s29 + $0x10] sm:$0xff] %v282_v15 }
  0xea PF: > { %s13_s12 = sadd.s32 1, %s408_s12  }
  0xeb   : > { %p10_p4 = scmp.ge.s32.totalorder %s13_s12, 4  }
  0xed   :  { %12 = sbr.rel (!%p10_p4) target bundleno = 1 (0x1), region = 62 }

</bundles_post_ra>
